<compile_context>
chip_gen: v6e
topology: v6e:2x2x1
jax: 0.10.0
libtpu: 0.0.40
codegen_flags: <defaults>
</compile_context>

<pallas_src>
import jax
import jax.numpy as jnp
from jax.experimental import pallas as pl
from jax.experimental.pallas import tpu as pltpu


def _gram_kernel(x_ref, o_ref):
    # x_ref: (1, N, K) VMEM block holding one batch element's embeddings.
    x = x_ref[0]                                              # (N, K)
    o_ref[0] = jnp.dot(
        x, x.T, preferred_element_type=jnp.float32
    ).astype(o_ref.dtype)                                     # (N, N), lane-dense store


def embed2graph_by_product(x):
    """m[i, j, p] = sum_k x[i, j, k] * x[i, p, k]; returns (B, N, N, 1)."""
    B, N, K = x.shape
    m = pl.pallas_call(
        _gram_kernel,
        out_shape=jax.ShapeDtypeStruct((B, N, N), x.dtype),
        grid=(B,),
        in_specs=[pl.BlockSpec((1, N, K), lambda b: (b, 0, 0))],
        out_specs=pl.BlockSpec((1, N, N), lambda b: (b, 0, 0)),
        compiler_params=pltpu.CompilerParams(
            # 'parallel' lets Mosaic shard the batch axis across both v7x
            # TensorCores; measured-neutral on single-TC v5e/v6e.
            dimension_semantics=("parallel",),
            # Explicit cap keeps the kernel portable (v7x has only 64 MiB VMEM);
            # current footprint per step is (N*K + N*N) * 4 bytes << 1 MiB.
            vmem_limit_bytes=32 << 20,
        ),
    )(x)
    # torch.unsqueeze(m, -1): metadata-only reshape, kept outside the kernel so
    # the Pallas output store stays lane-dense.
    return m[..., None]


if __name__ == "__main__":
    key = jax.random.PRNGKey(0)
    # x ~ (batch, num_nodes, embedding_dim) as the einsum implies.
    B, N, K = 2, 128, 32
    x = jax.random.normal(key, (B, N, K), jnp.float32)

    fwd = jax.jit(embed2graph_by_product)
    m = fwd(x)
    jax.block_until_ready(m)

    ref = jnp.einsum('ijk,ipk->ijp', x, x)[..., None]
    assert m.shape == (B, N, N, 1), m.shape
    assert bool(jnp.allclose(m, ref, atol=1e-4, rtol=1e-4)), "mismatch vs einsum reference"
    print("KERNEL_OK")
</pallas_src>

<mosaic_0001>
module attributes {stable_mosaic.version = 11 : i64} {
  func.func @_gram_kernel(%arg0: i32, %arg1: memref<1x128x32xf32, #tpu.memory_space<vmem>>, %arg2: memref<1x128x128xf32, #tpu.memory_space<vmem>>) attributes {dimension_semantics = [#tpu.dimension_semantics<parallel>], iteration_bounds = array<i64: 2>, scalar_prefetch = 0 : i64, scratch_operands = 0 : i64, tpu.core_type = #tpu.core_type<tc>, window_params = [{transform_indices = @transform_0, window_bounds = array<i64: 1, 128, 32>}, {transform_indices = @transform_1, window_bounds = array<i64: 1, 128, 128>}]} {
    %c0 = arith.constant 0 : index
    %c0_0 = arith.constant 0 : index
    %c0_1 = arith.constant 0 : index
    %0 = vector.load %arg1[%c0, %c0_0, %c0_1] : memref<1x128x32xf32, #tpu.memory_space<vmem>>, vector<1x128x32xf32>
    %1 = vector.shape_cast %0 : vector<1x128x32xf32> to vector<128x32xf32>
    %2 = tpu.transpose %1, [1, 0] : vector<128x32xf32> -> vector<32x128xf32>
    %cst = arith.constant dense<0.000000e+00> : vector<128x128xf32>
    %3 = tpu.matmul %1, %2, %cst {dimension_numbers = #tpu.dot_dimension_numbers<[1], [0], [0], [1], [0, 0, 1, 1], [], []>} : vector<128x32xf32>, vector<32x128xf32>, vector<128x128xf32> -> vector<128x128xf32>
    %c0_2 = arith.constant 0 : index
    %c0_3 = arith.constant 0 : index
    %c0_4 = arith.constant 0 : index
    %4 = vector.load %arg2[%c0_2, %c0_3, %c0_4] : memref<1x128x128xf32, #tpu.memory_space<vmem>>, vector<1x128x128xf32>
    %5 = vector.shape_cast %4 : vector<1x128x128xf32> to vector<128x128xf32>
    %6 = vector.shape_cast %3 : vector<128x128xf32> to vector<1x128x128xf32>
    tpu.vector_store %arg2[%c0_2, %c0_3, %c0_4], %6 {strides = array<i32>} : memref<1x128x128xf32, #tpu.memory_space<vmem>>, vector<1x128x128xf32>,
    return
  }
  func.func @transform_0(%arg0: i32) -> (i32, i32, i32) {
    %c0_i32 = arith.constant 0 : i32
    %c0_i32_0 = arith.constant 0 : i32
    %c0_i32_1 = arith.constant 0 : i32
    return %arg0, %c0_i32, %c0_i32_0 : i32, i32, i32
  }
  func.func @transform_1(%arg0: i32) -> (i32, i32, i32) {
    %c0_i32 = arith.constant 0 : i32
    %c0_i32_0 = arith.constant 0 : i32
    %c0_i32_1 = arith.constant 0 : i32
    return %arg0, %c0_i32, %c0_i32_0 : i32, i32, i32
  }
}

</mosaic_0001>

<bundles_post_ra>
// kernel: embed2graph_by_product.1
= control target key start
LH: loop header
LB: loop body
LE: loop exit
PB: predicated region body
PF: predicated region fallthrough
CT: control target
= control target key end

     0   :  { %6 = vsyncpa [#allocation3], 0  ;;  %s964_s0 = inlined_call_operand.vmem [shape: f32[2,128,32], index: 0, kind: input, shape index: {}]   ;;  %s965_s1 = inlined_call_operand.hbm [shape: f32[2,128,128], index: 1, kind: output, shape index: {}]  }
   0x1   :  { %8 = vsyncpa [#allocation3 + $0x1], 0  ;;  %s699_s6 = smov 0   ;;  %s701_s7 = smov 0  }
   0x2   :  { %s703_s8 = smov 0   ;;  %s705_s9 = smov 0  }
   0x3 LB: > { %s720_s10 = sadd.s32 4294967295, %s684_s9   ;;  %s417_s11 = sadd.s32 4294967294, %s684_s9   ;;  %s684_s9 = sphi %s705_s9, %s971_s9   ;;  %s680_s8 = sphi %s703_s8, %s970_s8   ;;  %s676_s7 = sphi %s701_s7, %s969_s7   ;;  %s672_s6 = sphi %s699_s6, %s968_s6  }
   0x4   : > { %s724_s12 = sadd.s32 1, %s684_s9   ;;  %s47_s13 = sadd.s32 1, %s680_s8 }
   0x5   : > { %s44_s14 = ssub.s32 %s684_s9, %s724_s12  ;;  %p57_p0 = scmp.ne.s32.totalorder %s680_s8, %s676_s7 }
   0x6   : > { %p45_p1 = scmp.eq.s32.totalorder %s44_s14, 0  ;;  %p58_p2 = scmp.eq.s32.totalorder %s720_s10, 1 }
   0x7   : > { %p63_p3 = scmp.ne.s32.totalorder %s676_s7, %s672_s6  ;;  %p64_p4 = scmp.eq.s32.totalorder %s417_s11, 1 }
   0x8   : > { %s735_s15 = scalar_select %p45_p1, %s680_s8, %s47_s13  }
   0x9   : > { %p737_p5 = por %p58_p2, %p57_p0  ;;  %p741_p6 = por %p64_p4, %p63_p3 }
   0xa   : > { %p420_p7 = scmp.ge.s32.totalorder %s684_s9, 1  ;;  %p90_p8 = scmp.lt.s32.totalorder %s684_s9, 3 }
   0xc   : > { %p91_p9 = pnand %p420_p7, %p90_p8 }
   0xd   : > { %p110_p10 = scmp.lt.s32.totalorder (!%p91_p9), %s720_s10, 1  ;;  %s107_s23 = sand.u32 (!%p91_p9), 1, %s676_s7  }
   0xe   : > { %94 = sbr.rel (%p91_p9) target bundleno = 309 (0x135), region = 24  ;;  %s421_s24 = sshll.u32 (!%p91_p9), %s107_s23, 7 }
   0xf   : > { %s895_s25 = scalar_lea.vmem (!%p91_p9), [#allocation2], %s421_s24  ;;  %s462_s26 = sshll.u32 (!%p91_p9), %s720_s10, 11 }
  0x10   : > { %s355_s27 = sshll.u32 (!%p91_p9), %s895_s25, 4  ;;  %s914_s30 = scalar_lea.hbm (!%p91_p9), %s965_s1, %s462_s26  ;;  %s916_s27 = int_to_ptr.vmem [resolvable:$true] %s355_s27 }
  0x11   : > { %s924_s2 = scalar_lea.sflag (!%p91_p9), [#allocation3], %s107_s23  ;;  %s624_s3 = scalar_lea.vmem (!%p91_p9), %s916_s27, 2048 }
  0x12   : > { %p625_p11 = scmp.ne.s32.totalorder (!%p91_p9), %s916_s27, %s624_s3  ;;  %s686_s4 = smov (!%p91_p9), [#allocation2]  }
  0x13   : > { %s111_s18 = scalar_select %p110_p10, %s720_s10, 1  ;;  %vm131_vm0 = vcmask 261120  }
  0x14   : > { %p626_p12 = pnand %p625_p11, %p737_p5  ;;  %s628_s5 = sshll.u32 %s686_s4, 4  ;;  %s629_s5 = int_to_ptr.vmem [resolvable:$false] %s628_s5 }
  0x15   : > { %s461_s19 = sshll.u32 %s111_s18, 7  ;;  %s630_s10 = scalar_lea.vmem %s629_s5, 4096 }
  0x16   : > { %s752_s22 = scalar_lea.vmem %s964_s0, %s461_s19  ;;  %p627_p13 = pneg %p626_p12 }
  0x17   : > { %v755_v0 = vld [vmem:[%s752_s22 + $0x78] sm:$0xff]  ;;  %v758_v1 = vld [vmem:[%s752_s22 + $0x70] sm:$0xff]  ;;  %v123_v2 = vld [vmem:[%s752_s22 + $0x40] sm:$0xff]  ;;  %p631_p0 = scmp.lt.s32.totalorder %s916_s27, %s629_s5  ;;  %p632_p1 = scmp.lt.s32.totalorder %s630_s10, %s624_s3 }
  0x18   : > { %495 = vmatprep.subr.msk.mxu0 %vm131_vm0, %v755_v0  ;;  %551 = vmatprep.subr.msk.mxu1 %vm131_vm0, %v755_v0  ;;  %v774_v3 = vld [vmem:[%s752_s22 + $0x68] sm:$0xff]  ;;  %v786_v4 = vld [vmem:[%s752_s22] sm:$0xff]  ;;  %v802_v6 = vld [vmem:[%s752_s22 + $0x58] sm:$0xff] }
  0x19   : > { %496 = vmatpush3.xpose.msk.msra.mxu0 %vm131_vm0, %v755_v0  ;;  %567 = vmatpush3.xpose.msk.msra.mxu1 %vm131_vm0, %v755_v0  ;;  %v789_v5 = vld [vmem:[%s752_s22 + $0x60] sm:$0xff]  ;;  %v125_v7 = vld [vmem:[%s752_s22 + $0x50] sm:$0xff]  ;;  %v124_v8 = vld [vmem:[%s752_s22 + $0x48] sm:$0xff]  ;;  %p633_p2 = por %p632_p1, %p631_p0 }
  0x1a   : > { %497 = vmatprep.subr.msk.mxu0 %vm131_vm0, %v758_v1  ;;  %552 = vmatprep.subr.msk.mxu1 %vm131_vm0, %v758_v1  ;;  %v122_v9 = vld [vmem:[%s752_s22 + $0x38] sm:$0xff]  ;;  %v121_v10 = vld [vmem:[%s752_s22 + $0x30] sm:$0xff]  ;;  %v120_v11 = vld [vmem:[%s752_s22 + $0x28] sm:$0xff] }
  0x1b   : > { %539 = vmatprep.mubr.msk.f32.mxu1 %vm131_vm0, %v123_v2  ;;  %527 = vmatprep.mubr.msk.f32.mxu0 %vm131_vm0, %v786_v4  ;;  %v119_v12 = vld [vmem:[%s752_s22 + $0x20] sm:$0xff]  ;;  %v118_v13 = vld [vmem:[%s752_s22 + $0x18] sm:$0xff]  ;;  %v117_v14 = vld [vmem:[%s752_s22 + $0x10] sm:$0xff]  ;;  %p634_p3 = pnand %p633_p2, %p627_p13 }
  0x1c   : > { %v116_v15 = vld [vmem:[%s752_s22 + $0x8] sm:$0xff] }
  0x1d   : > { %498 = vmatpush3.xpose.msk.msra.mxu0 %vm131_vm0, %v758_v1  ;;  %568 = vmatpush3.xpose.msk.msra.mxu1 %vm131_vm0, %v758_v1 }
  0x1e   : > { %499 = vmatprep.subr.msk.mxu0 %vm131_vm0, %v774_v3  ;;  %553 = vmatprep.subr.msk.mxu1 %vm131_vm0, %v774_v3 }
  0x21   : > { %500 = vmatpush3.xpose.msk.msra.mxu0 %vm131_vm0, %v774_v3  ;;  %569 = vmatpush3.xpose.msk.msra.mxu1 %vm131_vm0, %v774_v3 }
  0x22   : > { %501 = vmatprep.subr.msk.mxu0 %vm131_vm0, %v789_v5  ;;  %554 = vmatprep.subr.msk.mxu1 %vm131_vm0, %v789_v5 }
  0x25   : > { %502 = vmatpush3.xpose.msk.msra.mxu0 %vm131_vm0, %v789_v5  ;;  %570 = vmatpush3.xpose.msk.msra.mxu1 %vm131_vm0, %v789_v5 }
  0x26   : > { %503 = vmatprep.subr.msk.mxu0 %vm131_vm0, %v802_v6  ;;  %555 = vmatprep.subr.msk.mxu1 %vm131_vm0, %v802_v6 }
  0x29   : > { %504 = vmatpush3.xpose.msk.msra.mxu0 %vm131_vm0, %v802_v6  ;;  %571 = vmatpush3.xpose.msk.msra.mxu1 %vm131_vm0, %v802_v6 }
  0x2a   : > { %505 = vmatprep.subr.msk.mxu0 %vm131_vm0, %v125_v7  ;;  %556 = vmatprep.subr.msk.mxu1 %vm131_vm0, %v125_v7 }
  0x2d   : > { %506 = vmatpush3.xpose.msk.msra.mxu0 %vm131_vm0, %v125_v7  ;;  %572 = vmatpush3.xpose.msk.msra.mxu1 %vm131_vm0, %v125_v7 }
  0x2e   : > { %507 = vmatprep.subr.msk.mxu0 %vm131_vm0, %v124_v8  ;;  %557 = vmatprep.subr.msk.mxu1 %vm131_vm0, %v124_v8 }
  0x31   : > { %508 = vmatpush3.xpose.msk.msra.mxu0 %vm131_vm0, %v124_v8  ;;  %573 = vmatpush3.xpose.msk.msra.mxu1 %vm131_vm0, %v124_v8 }
  0x32   : > { %509 = vmatprep.subr.msk.mxu0 %vm131_vm0, %v123_v2  ;;  %558 = vmatprep.subr.msk.mxu1 %vm131_vm0, %v123_v2 }
  0x35   : > { %510 = vmatpush3.xpose.msk.msra.mxu0 %vm131_vm0, %v123_v2  ;;  %574 = vmatpush3.xpose.msk.msra.mxu1 %vm131_vm0, %v123_v2 }
  0x36   : > { %511 = vmatprep.subr.msk.mxu0 %vm131_vm0, %v122_v9  ;;  %559 = vmatprep.subr.msk.mxu1 %vm131_vm0, %v122_v9 }
  0x39   : > { %512 = vmatpush3.xpose.msk.msra.mxu0 %vm131_vm0, %v122_v9  ;;  %575 = vmatpush3.xpose.msk.msra.mxu1 %vm131_vm0, %v122_v9 }
  0x3a   : > { %513 = vmatprep.subr.msk.mxu0 %vm131_vm0, %v121_v10  ;;  %560 = vmatprep.subr.msk.mxu1 %vm131_vm0, %v121_v10 }
  0x3d   : > { %514 = vmatpush3.xpose.msk.msra.mxu0 %vm131_vm0, %v121_v10  ;;  %576 = vmatpush3.xpose.msk.msra.mxu1 %vm131_vm0, %v121_v10 }
  0x3e   : > { %515 = vmatprep.subr.msk.mxu0 %vm131_vm0, %v120_v11  ;;  %561 = vmatprep.subr.msk.mxu1 %vm131_vm0, %v120_v11 }
  0x41   : > { %516 = vmatpush3.xpose.msk.msra.mxu0 %vm131_vm0, %v120_v11  ;;  %577 = vmatpush3.xpose.msk.msra.mxu1 %vm131_vm0, %v120_v11 }
  0x42   : > { %517 = vmatprep.subr.msk.mxu0 %vm131_vm0, %v119_v12  ;;  %562 = vmatprep.subr.msk.mxu1 %vm131_vm0, %v119_v12 }
  0x45   : > { %518 = vmatpush3.xpose.msk.msra.mxu0 %vm131_vm0, %v119_v12  ;;  %578 = vmatpush3.xpose.msk.msra.mxu1 %vm131_vm0, %v119_v12 }
  0x46   : > { %519 = vmatprep.subr.msk.mxu0 %vm131_vm0, %v118_v13  ;;  %563 = vmatprep.subr.msk.mxu1 %vm131_vm0, %v118_v13 }
  0x49   : > { %520 = vmatpush3.xpose.msk.msra.mxu0 %vm131_vm0, %v118_v13  ;;  %579 = vmatpush3.xpose.msk.msra.mxu1 %vm131_vm0, %v118_v13 }
  0x4a   : > { %521 = vmatprep.subr.msk.mxu0 %vm131_vm0, %v117_v14  ;;  %564 = vmatprep.subr.msk.mxu1 %vm131_vm0, %v117_v14 }
  0x4d   : > { %522 = vmatpush3.xpose.msk.msra.mxu0 %vm131_vm0, %v117_v14  ;;  %580 = vmatpush3.xpose.msk.msra.mxu1 %vm131_vm0, %v117_v14 }
  0x4e   : > { %523 = vmatprep.subr.msk.mxu0 %vm131_vm0, %v116_v15  ;;  %565 = vmatprep.subr.msk.mxu1 %vm131_vm0, %v116_v15 }
  0x51   : > { %524 = vmatpush3.xpose.msk.msra.mxu0 %vm131_vm0, %v116_v15  ;;  %581 = vmatpush3.xpose.msk.msra.mxu1 %vm131_vm0, %v116_v15 }
  0x52   : > { %525 = vmatprep.subr.msk.mxu0 %vm131_vm0, %v786_v4  ;;  %566 = vmatprep.subr.msk.mxu1 %vm131_vm0, %v786_v4 }
  0x55   : > { %526 = vmatpush3.xpose.msk.msra.mxu0 %vm131_vm0, %v786_v4  ;;  %582 = vmatpush3.xpose.msk.msra.mxu1 %vm131_vm0, %v786_v4 }
  0x58   : > { %528 = vmatmul.mubr.msk.f32.vlgmr.msra.gmra.mxu0 %vm131_vm0, %v116_v15  ;;  %540 = vmatmul.mubr.msk.f32.vlgmr.msra.gmra.mxu1 %vm131_vm0, %v124_v8 }
  0x59   : > { %530 = vmatprep.mubr.msk.f32.mxu0 %vm131_vm0, %v117_v14  ;;  %542 = vmatprep.mubr.msk.f32.mxu1 %vm131_vm0, %v125_v7 }
  0x5c   : > { %531 = vmatmul.mubr.msk.f32.gmra.mxu0 %vm131_vm0, %v118_v13  ;;  %543 = vmatmul.mubr.msk.f32.gmra.mxu1 %vm131_vm0, %v802_v6 }
  0x5d   : > { %533 = vmatprep.mubr.msk.f32.mxu0 %vm131_vm0, %v119_v12  ;;  %545 = vmatprep.mubr.msk.f32.mxu1 %vm131_vm0, %v789_v5 }
  0x60   : > { %534 = vmatmul.mubr.msk.f32.gmra.mxu0 %vm131_vm0, %v120_v11  ;;  %546 = vmatmul.mubr.msk.f32.gmra.mxu1 %vm131_vm0, %v774_v3 }
  0x61   : > { %536 = vmatprep.mubr.msk.f32.mxu0 %vm131_vm0, %v121_v10  ;;  %548 = vmatprep.mubr.msk.f32.mxu1 %vm131_vm0, %v758_v1 }
  0x64   : > { %537 = vmatmul.mubr.msk.f32.gmra.mxu0 %vm131_vm0, %v122_v9  ;;  %549 = vmatmul.mubr.msk.f32.gmra.mxu1 %vm131_vm0, %v755_v0 }
 0x118   : > { %v529_v16 = vpop.f32.mrf.mxu0  ;;  %v541_v17 = vpop.f32.mrf.mxu1 }
 0x119   : > { %326 = vst [vmem:[%s895_s25 + $0x8] sm:$0xff] %v529_v16  ;;  %334 = vst [vmem:[%s895_s25 + $0x48] sm:$0xff] %v541_v17 }
 0x11a   : > { %v246_v18 = vpop.f32.mrf.mxu0  ;;  %v286_v19 = vpop.f32.mrf.mxu1 }
 0x11b   : > { %325 = vst [vmem:[%s895_s25] sm:$0xff] %v246_v18  ;;  %333 = vst [vmem:[%s895_s25 + $0x40] sm:$0xff] %v286_v19 }
 0x11c   : > { %v532_v20 = vpop.f32.mrf.mxu0  ;;  %v544_v21 = vpop.f32.mrf.mxu1 }
 0x11d   : > { %328 = vst [vmem:[%s895_s25 + $0x18] sm:$0xff] %v532_v20  ;;  %336 = vst [vmem:[%s895_s25 + $0x58] sm:$0xff] %v544_v21 }
 0x11e   : > { %v256_v22 = vpop.f32.mrf.mxu0  ;;  %v296_v23 = vpop.f32.mrf.mxu1 }
 0x11f   : > { %327 = vst [vmem:[%s895_s25 + $0x10] sm:$0xff] %v256_v22  ;;  %335 = vst [vmem:[%s895_s25 + $0x50] sm:$0xff] %v296_v23 }
 0x120   : > { %v535_v24 = vpop.f32.mrf.mxu0  ;;  %v547_v25 = vpop.f32.mrf.mxu1 }
 0x121   : > { %330 = vst [vmem:[%s895_s25 + $0x28] sm:$0xff] %v535_v24  ;;  %338 = vst [vmem:[%s895_s25 + $0x68] sm:$0xff] %v547_v25 }
 0x122   : > { %v266_v26 = vpop.f32.mrf.mxu0  ;;  %v306_v27 = vpop.f32.mrf.mxu1 }
 0x123   : > { %329 = vst [vmem:[%s895_s25 + $0x20] sm:$0xff] %v266_v26  ;;  %337 = vst [vmem:[%s895_s25 + $0x60] sm:$0xff] %v306_v27 }
 0x124   : > { %v538_v28 = vpop.f32.mrf.mxu0  ;;  %v550_v29 = vpop.f32.mrf.mxu1 }
 0x125   : > { %332 = vst [vmem:[%s895_s25 + $0x38] sm:$0xff] %v538_v28  ;;  %340 = vst [vmem:[%s895_s25 + $0x78] sm:$0xff] %v550_v29 }
 0x126   : > { %v276_v30 = vpop.f32.mrf.mxu0  ;;  %v316_v31 = vpop.f32.mrf.mxu1 }
 0x127   : > { %331 = vst [vmem:[%s895_s25 + $0x30] sm:$0xff] %v276_v30  ;;  %339 = vst [vmem:[%s895_s25 + $0x70] sm:$0xff] %v316_v31 }
 0x128   : > { %637 = shalt.err (!%p634_p3)
}
 0x129   : > { %s638_s11 = scalar_lea.hbm %s914_s30, 2048  ;;  %s642_s18 = scalar_lea.hbm %s965_s1, 4096 }
 0x12a   : > { %p639_p4 = scmp.ne.s32.totalorder %s914_s30, %s638_s11  ;;  %p643_p9 = scmp.lt.s32.totalorder %s914_s30, %s965_s1 }
 0x12b   : > { %p644_p10 = scmp.lt.s32.totalorder %s642_s18, %s638_s11 }
 0x12c   : > { %p640_p7 = pnand %p639_p4, %p737_p5 }
 0x12d   : > { %p645_p11 = por %p644_p10, %p643_p9 }
 0x12e   : > { %p641_p8 = pneg %p640_p7 }
 0x130   : > { %p646_p12 = pnand %p645_p11, %p641_p8 }
 0x132   : > { %649 = shalt.err (!%p646_p12)
}
 0x133   : > { %s687_s21 = smov 128   ;;  %s688_s22 = smov 8  }
 0x134   : > { %583 = dma.vmem_to_hbm [thread:$0]  (%p737_p5), %s916_s27, 2048, %s914_s30, %s924_s2, %s687_s21, %s687_s21, %s688_s22  }
 0x135 PF: > { %p589_p13 = scmp.ge.s32.totalorder %s684_s9, 2  ;;  %s370_s23 = sand.u32 1, %s672_s6  }
 0x136   : > { %s371_s24 = scalar_lea.sflag [#allocation3], %s370_s23 }
 0x137   : > { %p586_p0 = pnand %p589_p13, %p741_p6 }
 0x139   : > { %p587_p1 = pneg %p586_p0 }
 0x13b   : > { %667 = dma.done.wait (%p587_p1), %s371_s24, 2048  }
 0x13c   : > { %669 = vsyncadd (%p587_p1), %s371_s24, 4294965248  ;;  %p11_p2 = scmp.ge.s32.totalorder %s724_s12, 4   ;;  %s968_s6 = smov %s676_s7 }
 0x13d   : > { %s969_s7 = smov %s680_s8  ;;  %s970_s8 = smov %s735_s15 }
 0x13e   : > { %s971_s9 = smov %s724_s12  ;;  %13 = sbr.rel (!%p11_p2) target bundleno = 3 (0x3), region = 59 }
 0x143   :  { %376 = vsyncpa [#allocation3], 1 }
 0x144   :  { %378 = vsyncpa [#allocation3 + $0x1], 1 }

</bundles_post_ra>
